<compile_context>
chip_gen: v6e
topology: v6e:2x2x1
jax: 0.10.0
libtpu: 0.0.40
codegen_flags: <defaults>
</compile_context>

<pallas_src>
import functools

import jax
import jax.numpy as jnp
import numpy as np
from jax.experimental import pallas as pl
from jax.experimental.pallas import tpu as pltpu


def _ff_kernel(x_ref, w1_ref, b1_ref, w2_ref, b2_ref, g_ref, be_ref, out_ref, *,
               activation_function, pre_lnorm, eps, h_chunk, gelu_approximate):
    # x_ref:  [TM, D]     w1_ref: [D, H]   b1_ref: [1, H]
    # w2_ref: [H, D]      b2_ref: [1, D]   g_ref/be_ref: [1, D]
    xf = x_ref[...].astype(jnp.float32)
    gamma = g_ref[...].astype(jnp.float32)
    beta = be_ref[...].astype(jnp.float32)

    def layer_norm(v):
        mu = jnp.mean(v, axis=-1, keepdims=True)
        var = jnp.mean(jnp.square(v - mu), axis=-1, keepdims=True)
        return (v - mu) * jax.lax.rsqrt(var + eps) * gamma + beta

    y = layer_norm(xf) if pre_lnorm else xf
    # Feed the MXU in the weight dtype (bf16 weights -> bf16 matmuls), f32 acc.
    y_mx = y.astype(w1_ref.dtype)

    tm = xf.shape[0]
    H = w1_ref.shape[1]
    D = w2_ref.shape[1]

    # CoreNet with the hidden dimension chunked: caps the f32 intermediate at
    # [TM, h_chunk] instead of [TM, H]; weights are already resident so this
    # adds zero HBM traffic.
    core = jnp.zeros((tm, D), jnp.float32)
    n_chunks = (H + h_chunk - 1) // h_chunk
    for c in range(n_chunks):
        lo = c * h_chunk
        hi = min(H, lo + h_chunk)
        h = jnp.dot(y_mx, w1_ref[:, lo:hi], preferred_element_type=jnp.float32)
        h = h + b1_ref[:, lo:hi].astype(jnp.float32)
        if activation_function == 'relu':
            h = jnp.maximum(h, 0.0)
        else:  # 'gelu' — exact (erf) form by default, matching torch.nn.GELU()
            h = jax.nn.gelu(h, approximate=gelu_approximate)
        # Dropout: identity (eval-mode forward).
        core = core + jnp.dot(h.astype(w2_ref.dtype), w2_ref[lo:hi, :],
                              preferred_element_type=jnp.float32)
    core = core + b2_ref[...].astype(jnp.float32)

    if pre_lnorm:
        out = core + xf                 # residual after CoreNet
    else:
        out = layer_norm(xf + core)     # post-LN of (inp + core_out)

    out_ref[...] = out.astype(out_ref.dtype)


def _choose_row_tile(n, block_rows):
    """Row tile: multiple of 8 (sublane) unless it spans all rows; prefers
    >= 2 grid steps so a 2-TensorCore chip (v7x) keeps both cores busy."""
    block_rows = max(8, (block_rows // 8) * 8)
    if n > block_rows:
        return block_rows
    half = (((n + 1) // 2) + 7) // 8 * 8
    if 8 <= half < n:
        return half        # two (possibly ragged) tiles
    return n               # one full-array block (no divisibility constraint)


def _estimate_vmem_bytes(tm, D, H, th, x_itemsize, w_itemsize, out_itemsize):
    weights = 2 * (D * H + H * D) * w_itemsize          # assume worst-case 2 bufs
    smalls = 2 * (H + 3 * D) * 4
    streams = 2 * tm * D * (x_itemsize + out_itemsize)  # double-buffered x/out tiles
    scratch = tm * th * 4 + 2 * tm * D * 4               # hidden chunk + f32 temps
    est = weights + smalls + streams + scratch
    return int(min(100 << 20, max(32 << 20, int(est * 1.25) + (4 << 20))))


def positionwise_ff_forward(inp, params, *, activation_function='relu',
                            pre_lnorm=False, dropout=0.0, eps=1e-5,
                            block_rows=256, h_block=2048,
                            weight_dtype=jnp.bfloat16, gelu_approximate=False):
    """inp: [S, B, d_model] -> [S, B, d_model] (PositionwiseFF.forward, eval mode)."""
    del dropout  # identity in eval-mode forward
    if activation_function not in ('relu', 'gelu'):
        raise ValueError(activation_function)

    S, B, D = inp.shape
    w1, b1, w2, b2, gamma, beta = params
    H = w1.shape[1]
    assert w1.shape == (D, H) and b1.shape == (1, H)
    assert w2.shape == (H, D) and b2.shape == (1, D)
    assert gamma.shape == (1, D) and beta.shape == (1, D)
    # NOTE: for best MXU / store efficiency D and H should be multiples of 128
    # (ideally 256 on v6e/v7x); smaller values still work, at lower utilization.

    N = S * B
    x2d = inp.reshape(N, D)

    # Cast the big matrices to the MXU-friendly dtype (default bf16); keep the
    # small bias / LayerNorm vectors in f32 (negligible footprint, better acc).
    w1c = w1.astype(weight_dtype)
    w2c = w2.astype(weight_dtype)

    tm = _choose_row_tile(N, block_rows)
    th = min(H, int(h_block))
    grid = (pl.cdiv(N, tm),)   # ragged last tile handled by Pallas masking

    vmem_limit = _estimate_vmem_bytes(
        tm, D, H, th,
        jnp.dtype(inp.dtype).itemsize,
        jnp.dtype(weight_dtype).itemsize,
        jnp.dtype(inp.dtype).itemsize)

    kernel = functools.partial(
        _ff_kernel,
        activation_function=activation_function,
        pre_lnorm=bool(pre_lnorm),
        eps=float(eps),
        h_chunk=int(th),
        gelu_approximate=bool(gelu_approximate),
    )

    def _build(weight_mode):
        def wspec(shape):
            kwargs = {} if weight_mode is None else {"pipeline_mode": weight_mode}
            return pl.BlockSpec(shape, lambda i: (0,) * len(shape), **kwargs)

        return pl.pallas_call(
            kernel,
            out_shape=jax.ShapeDtypeStruct((N, D), inp.dtype),
            grid_spec=pltpu.PrefetchScalarGridSpec(
                num_scalar_prefetch=0,
                grid=grid,
                in_specs=[
                    pl.BlockSpec((tm, D), lambda i: (i, 0)),   # x  (streamed)
                    wspec((D, H)),                             # w1 (resident)
                    wspec((1, H)),                             # b1
                    wspec((H, D)),                             # w2 (resident)
                    wspec((1, D)),                             # b2
                    wspec((1, D)),                             # LN gamma
                    wspec((1, D)),                             # LN beta
                ],
                out_specs=pl.BlockSpec((tm, D), lambda i: (i, 0)),
            ),
            compiler_params=pltpu.CompilerParams(
                dimension_semantics=("parallel",),
                vmem_limit_bytes=vmem_limit,
            ),
        )

    args = (x2d, w1c, b1, w2c, b2, gamma, beta)
    try:
        # Constant-index operands don't need double buffering: halve their VMEM.
        out2d = _build(pl.Buffered(1))(*args)
    except Exception:
        # Fallback if this Pallas version rejects single-buffered pipeline_mode.
        out2d = _build(None)(*args)

    return out2d.reshape(S, B, D)


def init_params(key, d_model, d_inner):
    """nn.Linear-style init + LayerNorm(gamma=1, beta=0)."""
    k1, k2, k3, k4 = jax.random.split(key, 4)
    lim1 = 1.0 / np.sqrt(d_model)
    lim2 = 1.0 / np.sqrt(d_inner)
    w1 = jax.random.uniform(k1, (d_model, d_inner), jnp.float32, -lim1, lim1)
    b1 = jax.random.uniform(k2, (1, d_inner), jnp.float32, -lim1, lim1)
    w2 = jax.random.uniform(k3, (d_inner, d_model), jnp.float32, -lim2, lim2)
    b2 = jax.random.uniform(k4, (1, d_model), jnp.float32, -lim2, lim2)
    gamma = jnp.ones((1, d_model), jnp.float32)
    beta = jnp.zeros((1, d_model), jnp.float32)
    return w1, b1, w2, b2, gamma, beta


def _reference(inp, params, activation_function, pre_lnorm, eps=1e-5):
    """Pure-JAX f32 reference of PositionwiseFF.forward (eval mode)."""
    w1, b1, w2, b2, gamma, beta = params

    def ln(v):
        mu = v.mean(-1, keepdims=True)
        var = ((v - mu) ** 2).mean(-1, keepdims=True)
        return (v - mu) / jnp.sqrt(var + eps) * gamma[0] + beta[0]

    def core(v):
        h = v @ w1 + b1[0]
        if activation_function == 'relu':
            h = jnp.maximum(h, 0.0)
        else:
            h = jax.nn.gelu(h, approximate=False)
        return h @ w2 + b2[0]

    if pre_lnorm:
        return core(ln(inp)) + inp
    return ln(inp + core(inp))


if __name__ == "__main__":
    d_model, d_inner = 128, 256   # lane-dense (multiples of 128), still small

    key = jax.random.PRNGKey(0)
    k_x1, k_x2, k_p = jax.random.split(key, 3)
    params = init_params(k_p, d_model, d_inner)

    S1, B1 = 8, 2    # 16 rows -> two full 8-row tiles (megacore-friendly grid)
    inp1 = jax.random.normal(k_x1, (S1, B1, d_model), jnp.float32)
    S2, B2 = 5, 3    # 15 rows -> ragged last tile (partial-block masking path)
    inp2 = jax.random.normal(k_x2, (S2, B2, d_model), jnp.float32)

    # f32 weight path: tight check against the pure-JAX reference.
    for inp in (inp1, inp2):
        for act in ('relu', 'gelu'):
            for pre in (False, True):
                out = positionwise_ff_forward(
                    inp, params, activation_function=act, pre_lnorm=pre,
                    dropout=0.1, weight_dtype=jnp.float32)
                jax.block_until_ready(out)
                ref = _reference(inp, params, act, pre)
                np.testing.assert_allclose(
                    np.asarray(out), np.asarray(ref), rtol=2e-5, atol=2e-5)
                assert out.shape == inp.shape

    # Default bf16 weight path (MXU-rate matmuls): looser tolerance vs f32 ref.
    out_bf16 = positionwise_ff_forward(
        inp1, params, activation_function='gelu', pre_lnorm=True, dropout=0.1)
    jax.block_until_ready(out_bf16)
    ref_bf16 = _reference(inp1, params, 'gelu', True)
    np.testing.assert_allclose(
        np.asarray(out_bf16), np.asarray(ref_bf16), rtol=3e-2, atol=3e-2)

    print("KERNEL_OK")
</pallas_src>

<mosaic_0001>
module attributes {stable_mosaic.version = 11 : i64} {
  func.func @_ff_kernel(%arg0: i32, %arg1: memref<8x128xf32, #tpu.memory_space<vmem>>, %arg2: memref<128x256xf32, #tpu.memory_space<vmem>>, %arg3: memref<1x256xf32, #tpu.memory_space<vmem>>, %arg4: memref<256x128xf32, #tpu.memory_space<vmem>>, %arg5: memref<1x128xf32, #tpu.memory_space<vmem>>, %arg6: memref<1x128xf32, #tpu.memory_space<vmem>>, %arg7: memref<1x128xf32, #tpu.memory_space<vmem>>, %arg8: memref<8x128xf32, #tpu.memory_space<vmem>>) attributes {dimension_semantics = [#tpu.dimension_semantics<parallel>], iteration_bounds = array<i64: 2>, scalar_prefetch = 0 : i64, scratch_operands = 0 : i64, tpu.core_type = #tpu.core_type<tc>, window_params = [{transform_indices = @transform_0, window_bounds = array<i64: 8, 128>}, {pipeline_mode = #tpu.pipeline_mode<synchronous>, transform_indices = @transform_1, window_bounds = array<i64: 128, 256>}, {pipeline_mode = #tpu.pipeline_mode<synchronous>, transform_indices = @transform_2, window_bounds = array<i64: 1, 256>}, {pipeline_mode = #tpu.pipeline_mode<synchronous>, transform_indices = @transform_3, window_bounds = array<i64: 256, 128>}, {pipeline_mode = #tpu.pipeline_mode<synchronous>, transform_indices = @transform_4, window_bounds = array<i64: 1, 128>}, {pipeline_mode = #tpu.pipeline_mode<synchronous>, transform_indices = @transform_5, window_bounds = array<i64: 1, 128>}, {pipeline_mode = #tpu.pipeline_mode<synchronous>, transform_indices = @transform_6, window_bounds = array<i64: 1, 128>}, {transform_indices = @transform_7, window_bounds = array<i64: 8, 128>}]} {
    %c0 = arith.constant 0 : index
    %c0_0 = arith.constant 0 : index
    %0 = vector.load %arg1[%c0, %c0_0] : memref<8x128xf32, #tpu.memory_space<vmem>>, vector<8x128xf32>
    %c0_1 = arith.constant 0 : index
    %c0_2 = arith.constant 0 : index
    %1 = vector.load %arg6[%c0_1, %c0_2] : memref<1x128xf32, #tpu.memory_space<vmem>>, vector<1x128xf32>
    %c0_3 = arith.constant 0 : index
    %c0_4 = arith.constant 0 : index
    %2 = vector.load %arg7[%c0_3, %c0_4] : memref<1x128xf32, #tpu.memory_space<vmem>>, vector<1x128xf32>
    %cst = arith.constant 0.000000e+00 : f32
    %3 = vector.broadcast %cst : f32 to vector<8x128xf32>
    %c0_5 = arith.constant 0 : index
    %c0_6 = arith.constant 0 : index
    %4 = vector.load %arg2[%c0_5, %c0_6] : memref<128x256xf32, #tpu.memory_space<vmem>>, vector<128x256xf32>
    %cst_7 = arith.constant dense<0.000000e+00> : vector<8x256xf32>
    %5 = tpu.matmul %0, %4, %cst_7 {dimension_numbers = #tpu.dot_dimension_numbers<[1], [0], [0], [1], [0, 0, 1, 1], [], []>} : vector<8x128xf32>, vector<128x256xf32>, vector<8x256xf32> -> vector<8x256xf32>
    %c0_8 = arith.constant 0 : index
    %c0_9 = arith.constant 0 : index
    %6 = vector.load %arg3[%c0_8, %c0_9] : memref<1x256xf32, #tpu.memory_space<vmem>>, vector<1x256xf32>
    %7 = vector.broadcast %6 : vector<1x256xf32> to vector<8x256xf32>
    %8 = arith.addf %5, %7 : vector<8x256xf32>
    %cst_10 = arith.constant 0.000000e+00 : f32
    %9 = vector.broadcast %cst_10 : f32 to vector<8x256xf32>
    %10 = arith.maximumf %8, %9 : vector<8x256xf32>
    %c0_11 = arith.constant 0 : index
    %c0_12 = arith.constant 0 : index
    %11 = vector.load %arg4[%c0_11, %c0_12] : memref<256x128xf32, #tpu.memory_space<vmem>>, vector<256x128xf32>
    %cst_13 = arith.constant dense<0.000000e+00> : vector<8x128xf32>
    %12 = tpu.matmul %10, %11, %cst_13 {dimension_numbers = #tpu.dot_dimension_numbers<[1], [0], [0], [1], [0, 0, 1, 1], [], []>} : vector<8x256xf32>, vector<256x128xf32>, vector<8x128xf32> -> vector<8x128xf32>
    %13 = arith.addf %3, %12 : vector<8x128xf32>
    %c0_14 = arith.constant 0 : index
    %c0_15 = arith.constant 0 : index
    %14 = vector.load %arg5[%c0_14, %c0_15] : memref<1x128xf32, #tpu.memory_space<vmem>>, vector<1x128xf32>
    %15 = vector.broadcast %14 : vector<1x128xf32> to vector<8x128xf32>
    %16 = arith.addf %13, %15 : vector<8x128xf32>
    %17 = arith.addf %0, %16 : vector<8x128xf32>
    %cst_16 = arith.constant dense<0.000000e+00> : vector<8xf32>
    %18 = vector.multi_reduction <add>, %17, %cst_16 [1] : vector<8x128xf32> to vector<8xf32>
    %19 = vector.shape_cast %18 : vector<8xf32> to vector<8x1xf32>
    %cst_17 = arith.constant 1.280000e+02 : f32
    %20 = vector.broadcast %cst_17 : f32 to vector<8x1xf32>
    %21 = arith.divf %19, %20 : vector<8x1xf32>
    %22 = vector.broadcast %21 : vector<8x1xf32> to vector<8x128xf32>
    %23 = arith.subf %17, %22 : vector<8x128xf32>
    %24 = arith.mulf %23, %23 : vector<8x128xf32>
    %cst_18 = arith.constant dense<0.000000e+00> : vector<8xf32>
    %25 = vector.multi_reduction <add>, %24, %cst_18 [1] : vector<8x128xf32> to vector<8xf32>
    %26 = vector.shape_cast %25 : vector<8xf32> to vector<8x1xf32>
    %cst_19 = arith.constant 1.280000e+02 : f32
    %27 = vector.broadcast %cst_19 : f32 to vector<8x1xf32>
    %28 = arith.divf %26, %27 : vector<8x1xf32>
    %29 = vector.broadcast %21 : vector<8x1xf32> to vector<8x128xf32>
    %30 = arith.subf %17, %29 : vector<8x128xf32>
    %cst_20 = arith.constant 9.99999974E-6 : f32
    %31 = vector.broadcast %cst_20 : f32 to vector<8x1xf32>
    %32 = arith.addf %28, %31 : vector<8x1xf32>
    %33 = math.rsqrt %32 : vector<8x1xf32>
    %34 = vector.broadcast %33 : vector<8x1xf32> to vector<8x128xf32>
    %35 = arith.mulf %30, %34 : vector<8x128xf32>
    %36 = vector.broadcast %1 : vector<1x128xf32> to vector<8x128xf32>
    %37 = arith.mulf %35, %36 : vector<8x128xf32>
    %38 = vector.broadcast %2 : vector<1x128xf32> to vector<8x128xf32>
    %39 = arith.addf %37, %38 : vector<8x128xf32>
    %c0_21 = arith.constant 0 : index
    %c0_22 = arith.constant 0 : index
    %40 = vector.load %arg8[%c0_21, %c0_22] : memref<8x128xf32, #tpu.memory_space<vmem>>, vector<8x128xf32>
    tpu.vector_store %arg8[%c0_21, %c0_22], %39 {strides = array<i32>} : memref<8x128xf32, #tpu.memory_space<vmem>>, vector<8x128xf32>,
    return
  }
  func.func @transform_0(%arg0: i32) -> (i32, i32) {
    %c0_i32 = arith.constant 0 : i32
    %c0_i32_0 = arith.constant 0 : i32
    return %arg0, %c0_i32 : i32, i32
  }
  func.func @transform_1(%arg0: i32) -> (i32, i32) {
    %c0_i32 = arith.constant 0 : i32
    %c0_i32_0 = arith.constant 0 : i32
    %c0_i32_1 = arith.constant 0 : i32
    return %c0_i32, %c0_i32_0 : i32, i32
  }
  func.func @transform_2(%arg0: i32) -> (i32, i32) {
    %c0_i32 = arith.constant 0 : i32
    %c0_i32_0 = arith.constant 0 : i32
    %c0_i32_1 = arith.constant 0 : i32
    return %c0_i32, %c0_i32_0 : i32, i32
  }
  func.func @transform_3(%arg0: i32) -> (i32, i32) {
    %c0_i32 = arith.constant 0 : i32
    %c0_i32_0 = arith.constant 0 : i32
    %c0_i32_1 = arith.constant 0 : i32
    return %c0_i32, %c0_i32_0 : i32, i32
  }
  func.func @transform_4(%arg0: i32) -> (i32, i32) {
    %c0_i32 = arith.constant 0 : i32
    %c0_i32_0 = arith.constant 0 : i32
    %c0_i32_1 = arith.constant 0 : i32
    return %c0_i32, %c0_i32_0 : i32, i32
  }
  func.func @transform_5(%arg0: i32) -> (i32, i32) {
    %c0_i32 = arith.constant 0 : i32
    %c0_i32_0 = arith.constant 0 : i32
    %c0_i32_1 = arith.constant 0 : i32
    return %c0_i32, %c0_i32_0 : i32, i32
  }
  func.func @transform_6(%arg0: i32) -> (i32, i32) {
    %c0_i32 = arith.constant 0 : i32
    %c0_i32_0 = arith.constant 0 : i32
    %c0_i32_1 = arith.constant 0 : i32
    return %c0_i32, %c0_i32_0 : i32, i32
  }
  func.func @transform_7(%arg0: i32) -> (i32, i32) {
    %c0_i32 = arith.constant 0 : i32
    %c0_i32_0 = arith.constant 0 : i32
    return %arg0, %c0_i32 : i32, i32
  }
}

module attributes {stable_mosaic.version = 11 : i64} {
  func.func @_ff_kernel(%arg0: i32, %arg1: memref<8x128xf32, #tpu.memory_space<vmem>>, %arg2: memref<128x256xf32, #tpu.memory_space<vmem>>, %arg3: memref<1x256xf32, #tpu.memory_space<vmem>>, %arg4: memref<256x128xf32, #tpu.memory_space<vmem>>, %arg5: memref<1x128xf32, #tpu.memory_space<vmem>>, %arg6: memref<1x128xf32, #tpu.memory_space<vmem>>, %arg7: memref<1x128xf32, #tpu.memory_space<vmem>>, %arg8: memref<8x128xf32, #tpu.memory_space<vmem>>) attributes {dimension_semantics = [#tpu.dimension_semantics<parallel>], iteration_bounds = array<i64: 2>, scalar_prefetch = 0 : i64, scratch_operands = 0 : i64, tpu.core_type = #tpu.core_type<tc>, window_params = [{transform_indices = @transform_0, window_bounds = array<i64: 8, 128>}, {pipeline_mode = #tpu.pipeline_mode<synchronous>, transform_indices = @transform_1, window_bounds = array<i64: 128, 256>}, {pipeline_mode = #tpu.pipeline_mode<synchronous>, transform_indices = @transform_2, window_bounds = array<i64: 1, 256>}, {pipeline_mode = #tpu.pipeline_mode<synchronous>, transform_indices = @transform_3, window_bounds = array<i64: 256, 128>}, {pipeline_mode = #tpu.pipeline_mode<synchronous>, transform_indices = @transform_4, window_bounds = array<i64: 1, 128>}, {pipeline_mode = #tpu.pipeline_mode<synchronous>, transform_indices = @transform_5, window_bounds = array<i64: 1, 128>}, {pipeline_mode = #tpu.pipeline_mode<synchronous>, transform_indices = @transform_6, window_bounds = array<i64: 1, 128>}, {transform_indices = @transform_7, window_bounds = array<i64: 8, 128>}]} {
    %c0 = arith.constant 0 : index
    %c0_0 = arith.constant 0 : index
    %0 = vector.load %arg1[%c0, %c0_0] : memref<8x128xf32, #tpu.memory_space<vmem>>, vector<8x128xf32>
    %c0_1 = arith.constant 0 : index
    %c0_2 = arith.constant 0 : index
    %1 = vector.load %arg6[%c0_1, %c0_2] : memref<1x128xf32, #tpu.memory_space<vmem>>, vector<1x128xf32>
    %c0_3 = arith.constant 0 : index
    %c0_4 = arith.constant 0 : index
    %2 = vector.load %arg7[%c0_3, %c0_4] : memref<1x128xf32, #tpu.memory_space<vmem>>, vector<1x128xf32>
    %cst = arith.constant 0.000000e+00 : f32
    %3 = vector.broadcast %cst : f32 to vector<8x128xf32>
    %c0_5 = arith.constant 0 : index
    %c0_6 = arith.constant 0 : index
    %4 = vector.load %arg2[%c0_5, %c0_6] : memref<128x256xf32, #tpu.memory_space<vmem>>, vector<128x256xf32>
    %cst_7 = arith.constant dense<0.000000e+00> : vector<8x256xf32>
    %5 = tpu.matmul %0, %4, %cst_7 {dimension_numbers = #tpu.dot_dimension_numbers<[1], [0], [0], [1], [0, 0, 1, 1], [], []>} : vector<8x128xf32>, vector<128x256xf32>, vector<8x256xf32> -> vector<8x256xf32>
    %c0_8 = arith.constant 0 : index
    %c0_9 = arith.constant 0 : index
    %6 = vector.load %arg3[%c0_8, %c0_9] : memref<1x256xf32, #tpu.memory_space<vmem>>, vector<1x256xf32>
    %7 = vector.broadcast %6 : vector<1x256xf32> to vector<8x256xf32>
    %8 = arith.addf %5, %7 : vector<8x256xf32>
    %cst_10 = arith.constant 0.000000e+00 : f32
    %9 = vector.broadcast %cst_10 : f32 to vector<8x256xf32>
    %10 = arith.maximumf %8, %9 : vector<8x256xf32>
    %c0_11 = arith.constant 0 : index
    %c0_12 = arith.constant 0 : index
    %11 = vector.load %arg4[%c0_11, %c0_12] : memref<256x128xf32, #tpu.memory_space<vmem>>, vector<256x128xf32>
    %cst_13 = arith.constant dense<0.000000e+00> : vector<8x128xf32>
    %12 = tpu.matmul %10, %11, %cst_13 {dimension_numbers = #tpu.dot_dimension_numbers<[1], [0], [0], [1], [0, 0, 1, 1], [], []>} : vector<8x256xf32>, vector<256x128xf32>, vector<8x128xf32> -> vector<8x128xf32>
    %13 = arith.addf %3, %12 : vector<8x128xf32>
    %c0_14 = arith.constant 0 : index
    %c0_15 = arith.constant 0 : index
    %14 = vector.load %arg5[%c0_14, %c0_15] : memref<1x128xf32, #tpu.memory_space<vmem>>, vector<1x128xf32>
    %15 = vector.broadcast %14 : vector<1x128xf32> to vector<8x128xf32>
    %16 = arith.addf %13, %15 : vector<8x128xf32>
    %17 = arith.addf %0, %16 : vector<8x128xf32>
    %cst_16 = arith.constant dense<0.000000e+00> : vector<8xf32>
    %18 = vector.multi_reduction <add>, %17, %cst_16 [1] : vector<8x128xf32> to vector<8xf32>
    %19 = vector.shape_cast %18 : vector<8xf32> to vector<8x1xf32>
    %cst_17 = arith.constant 1.280000e+02 : f32
    %20 = vector.broadcast %cst_17 : f32 to vector<8x1xf32>
    %21 = arith.divf %19, %20 : vector<8x1xf32>
    %22 = vector.broadcast %21 : vector<8x1xf32> to vector<8x128xf32>
    %23 = arith.subf %17, %22 : vector<8x128xf32>
    %24 = arith.mulf %23, %23 : vector<8x128xf32>
    %cst_18 = arith.constant dense<0.000000e+00> : vector<8xf32>
    %25 = vector.multi_reduction <add>, %24, %cst_18 [1] : vector<8x128xf32> to vector<8xf32>
    %26 = vector.shape_cast %25 : vector<8xf32> to vector<8x1xf32>
    %cst_19 = arith.constant 1.280000e+02 : f32
    %27 = vector.broadcast %cst_19 : f32 to vector<8x1xf32>
    %28 = arith.divf %26, %27 : vector<8x1xf32>
    %29 = vector.broadcast %21 : vector<8x1xf32> to vector<8x128xf32>
    %30 = arith.subf %17, %29 : vector<8x128xf32>
    %cst_20 = arith.constant 9.99999974E-6 : f32
    %31 = vector.broadcast %cst_20 : f32 to vector<8x1xf32>
    %32 = arith.addf %28, %31 : vector<8x1xf32>
    %33 = math.rsqrt %32 : vector<8x1xf32>
    %34 = vector.broadcast %33 : vector<8x1xf32> to vector<8x128xf32>
    %35 = arith.mulf %30, %34 : vector<8x128xf32>
    %36 = vector.broadcast %1 : vector<1x128xf32> to vector<8x128xf32>
    %37 = arith.mulf %35, %36 : vector<8x128xf32>
    %38 = vector.broadcast %2 : vector<1x128xf32> to vector<8x128xf32>
    %39 = arith.addf %37, %38 : vector<8x128xf32>
    %c0_21 = arith.constant 0 : index
    %c0_22 = arith.constant 0 : index
    %40 = vector.load %arg8[%c0_21, %c0_22] : memref<8x128xf32, #tpu.memory_space<vmem>>, vector<8x128xf32>
    tpu.vector_store %arg8[%c0_21, %c0_22], %39 {strides = array<i32>} : memref<8x128xf32, #tpu.memory_space<vmem>>, vector<8x128xf32>,
    return
  }
  func.func @transform_0(%arg0: i32) -> (i32, i32) {
    %c0_i32 = arith.constant 0 : i32
    %c0_i32_0 = arith.constant 0 : i32
    return %arg0, %c0_i32 : i32, i32
  }
  func.func @transform_1(%arg0: i32) -> (i32, i32) {
    %c0_i32 = arith.constant 0 : i32
    %c0_i32_0 = arith.constant 0 : i32
    %c0_i32_1 = arith.constant 0 : i32
    return %c0_i32, %c0_i32_0 : i32, i32
  }
  func.func @transform_2(%arg0: i32) -> (i32, i32) {
    %c0_i32 = arith.constant 0 : i32
    %c0_i32_0 = arith.constant 0 : i32
    %c0_i32_1 = arith.constant 0 : i32
    return %c0_i32, %c0_i32_0 : i32, i32
  }
  func.func @transform_3(%arg0: i32) -> (i32, i32) {
    %c0_i32 = arith.constant 0 : i32
    %c0_i32_0 = arith.constant 0 : i32
    %c0_i32_1 = arith.constant 0 : i32
    return %c0_i32, %c0_i32_0 : i32, i32
  }
  func.func @transform_4(%arg0: i32) -> (i32, i32) {
    %c0_i32 = arith.constant 0 : i32
    %c0_i32_0 = arith.constant 0 : i32
    %c0_i32_1 = arith.constant 0 : i32
    return %c0_i32, %c0_i32_0 : i32, i32
  }
  func.func @transform_5(%arg0: i32) -> (i32, i32) {
    %c0_i32 = arith.constant 0 : i32
    %c0_i32_0 = arith.constant 0 : i32
    %c0_i32_1 = arith.constant 0 : i32
    return %c0_i32, %c0_i32_0 : i32, i32
  }
  func.func @transform_6(%arg0: i32) -> (i32, i32) {
    %c0_i32 = arith.constant 0 : i32
    %c0_i32_0 = arith.constant 0 : i32
    %c0_i32_1 = arith.constant 0 : i32
    return %c0_i32, %c0_i32_0 : i32, i32
  }
  func.func @transform_7(%arg0: i32) -> (i32, i32) {
    %c0_i32 = arith.constant 0 : i32
    %c0_i32_0 = arith.constant 0 : i32
    return %arg0, %c0_i32 : i32, i32
  }
}

</mosaic_0001>

<bundles_post_ra>
// kernel: tpu_custom_call.1
= control target key start
LH: loop header
LB: loop body
LE: loop exit
PB: predicated region body
PF: predicated region fallthrough
CT: control target
= control target key end

     0   :  { %s1194_s0 = inlined_call_operand.hbm [shape: f32[16,128], index: 0, kind: input, shape index: {}]   ;;  %s1195_s1 = inlined_call_operand.hbm [shape: f32[128,256], index: 1, kind: input, shape index: {}]   ;;  %s1196_s2 = inlined_call_operand.vmem [shape: f32[1,256], index: 2, kind: input, shape index: {}]   ;;  %s1197_s3 = inlined_call_operand.hbm [shape: f32[256,128], index: 3, kind: input, shape index: {}]   ;;  %s1198_s4 = inlined_call_operand.vmem [shape: f32[1,128], index: 4, kind: input, shape index: {}]   ;;  %s1199_s5 = inlined_call_operand.vmem [shape: f32[1,128], index: 5, kind: input, shape index: {}]   ;;  %s1200_s6 = inlined_call_operand.vmem [shape: f32[1,128], index: 6, kind: input, shape index: {}]   ;;  %s1201_s7 = inlined_call_operand.hbm [shape: f32[16,128], index: 7, kind: output, shape index: {}]  }
   0x1   :  { %1206 = sst [smem:[#allocation12_spill]] %s1195_s1 }
   0x2   :  { %1207 = sst [smem:[#allocation13_spill]] %s1197_s3 }
   0x3   :  { %12 = vsyncpa [#allocation3], 0 }
   0x4   :  { %14 = vsyncpa [#allocation3 + $0x1], 0 }
   0x5   :  { %15 = vsyncpa [#allocation6], 0 }
   0x6   :  { %16 = vsyncpa [#allocation4], 0 }
   0x7   :  { %18 = vsyncpa [#allocation4 + $0x1], 0  ;;  %s1010_s24 = smov 0   ;;  %s1012_s25 = smov 0  }
   0x8   :  { %s1014_s26 = smov 0   ;;  %s1016_s27 = smov 0  }
   0x9 LB: > { %s1031_s28 = sadd.s32 4294967295, %s959_s27   ;;  %s683_s29 = sadd.s32 4294967294, %s959_s27   ;;  %s959_s27 = sphi %s1016_s27, %s1227_s27   ;;  %s955_s26 = sphi %s1014_s26, %s1226_s26   ;;  %s951_s25 = sphi %s1012_s25, %s1225_s25   ;;  %s947_s24 = sphi %s1010_s24, %s1224_s24  }
   0xa   : > { %p44_p0 = scmp.ne.s32.totalorder %s951_s25, %s947_s24  ;;  %p1202_p1 = scmp.eq.s32.totalorder %s1031_s28, 0 }
   0xb   : > { %p200_p3 = scmp.eq.s32.totalorder %s683_s29, 1  ;;  %p684_p5 = scmp.ge.s32.totalorder %s959_s27, 1 }
   0xc   : > { %p1040_p4 = por %p1202_p1, %p44_p0  ;;  %p207_p7 = scmp.lt.s32.totalorder %s959_s27, 3 }
   0xd   : > { %p1045_p6 = por %p200_p3, %p44_p0  ;;  %s961_s10 = smov [#allocation5]  }
   0xe   : > { %s1208_s30 = scalar_select %p1040_p4, 1, 0 }
   0xf   : > { %s1209_s8 = scalar_select %p1045_p6, 1, 0 }
  0x10   : > { %p1050_p8 = pnand %p684_p5, %p207_p7  ;;  %s219_s11 = sshll.u32 %s961_s10, 4  ;;  %s220_s11 = int_to_ptr.vmem [resolvable:$true] %s219_s11 }
  0x11   : > { %s962_s13 = smov [#allocation7]   ;;  %s822_s15 = scalar_lea.vmem %s220_s11, 4096 }
  0x12   : > { %s1210_s9 = scalar_select %p1050_p8, 1, 0 }
  0x13   : > { %p749_p9 = pneg %p1050_p8  ;;  %s235_s14 = sshll.u32 %s962_s13, 4  ;;  %s236_s14 = int_to_ptr.vmem [resolvable:$true] %s235_s14 }
  0x14   : > { %p823_p13 = scmp.ne.s32.totalorder %s220_s11, %s822_s15  ;;  %p830_p5 = scmp.lt.s32.totalorder %s220_s11, %s220_s11 }
  0x15   : > { %p1059_p11 = pnand %p749_p9, %p1202_p1  ;;  %p831_p7 = scmp.lt.s32.totalorder %s822_s15, %s822_s15 }
  0x17   : > { %p813_p12 = pneg %p1059_p11  ;;  %p832_p10 = por %p831_p7, %p830_p5 }
  0x19   : > { %p825_p0 = pnand %p823_p13, %p813_p12 }
  0x1b   : > { %p826_p3 = pneg %p825_p0 }
  0x1d   : > { %p833_p9 = pnand %p832_p10, %p826_p3 }
  0x1f   : > { %836 = shalt.err (!%p833_p9)
}
  0x20   : > { %s963_s16 = smov 256   ;;  %s964_s17 = smov 16  }
  0x21   : > { %s1212_s1 = sld [smem:[#allocation12_spill]]  ;;  %s848_s20 = scalar_lea.vmem %s236_s14, 4096 }
  0x22   : > { %p849_p1 = scmp.ne.s32.totalorder %s236_s14, %s848_s20  ;;  %p856_p2 = scmp.lt.s32.totalorder %s236_s14, %s236_s14 }
  0x23   : > { %p857_p6 = scmp.lt.s32.totalorder %s848_s20, %s848_s20 }
  0x24   : > { %p851_p13 = pnand %p849_p1, %p813_p12 }
  0x25   : > { %p858_p5 = por %p857_p6, %p856_p2 }
  0x26   : > { %p852_p0 = pneg %p851_p13 }
  0x27   : > { %752 = dma.hbm_to_vmem [thread:$0]  (!%p1059_p11), %s1212_s1, 4096, %s220_s11, [#allocation6], %s963_s16, %s963_s16, %s964_s17  }
  0x28   : > { %p859_p10 = pnand %p858_p5, %p852_p0 }
  0x2a   : > { %862 = shalt.err (!%p859_p10)
}
  0x2b   : > { %s965_s21 = smov 128   ;;  %s966_s22 = smov 8  }
  0x2c   : > { %s1213_s3 = sld [smem:[#allocation13_spill]]  ;;  %s1082_s10 = sadd.s32 1, %s959_s27  }
  0x2d   : > { %s28_s11 = ssub.s32 %s959_s27, %s1082_s10  ;;  %s31_s13 = sadd.s32 1, %s955_s26 }
  0x2e   : > { %p29_p1 = scmp.eq.s32.totalorder %s28_s11, 0  ;;  %p38_p2 = scmp.ne.s32.totalorder %s955_s26, %s951_s25 }
  0x2f   : > { %p39_p6 = scmp.eq.s32.totalorder %s959_s27, 0  ;;  %p1214_p3 = scmp.eq.s32.totalorder %s1031_s28, 1 }
  0x30   : > { %s1091_s15 = scalar_select %p29_p1, %s955_s26, %s31_s13  }
  0x31   : > { %p40_p12 = por %p39_p6, %p38_p2  ;;  %p1095_p7 = por %p1214_p3, %p38_p2 }
  0x32   : > { %755 = dma.hbm_to_vmem [thread:$0]  (!%p1059_p11), %s1213_s3, 4096, %s236_s14, [#allocation6], %s965_s21, %s965_s21, %s966_s22  }
  0x33   : > { %s1215_s16 = scalar_select %p1095_p7, 1, 0 }
  0x34   : > { %p766_p9 = scmp.lt.s32.totalorder %s959_s27, 2  ;;  %s258_s12 = sand.u32 1, %s955_s26  }
  0x35   : > { %s688_s17 = sshll.u32 %s258_s12, 3  ;;  %s689_s14 = sshll.u32 %s959_s27, 7 }
  0x36   : > { %s1105_s20 = scalar_lea.hbm %s1194_s0, %s689_s14  ;;  %s262_s21 = scalar_lea.vmem [#allocation2], %s688_s17 }
  0x37   : > { %s269_s22 = sshll.u32 %s262_s21, 4  ;;  %p1107_p11 = pnand %p766_p9, %p40_p12  ;;  %s270_s22 = int_to_ptr.vmem [resolvable:$true] %s269_s22 }
  0x38   : > { %s259_s29 = scalar_lea.sflag [#allocation3], %s258_s12  ;;  %s863_s11 = scalar_lea.hbm %s1105_s20, 128 }
  0x39   : > { %p864_p13 = scmp.ne.s32.totalorder %s1105_s20, %s863_s11  ;;  %p865_p0 = pneg %p1107_p11 }
  0x3a   : > { %s868_s18 = scalar_lea.hbm %s1194_s0, 256  ;;  %p869_p1 = scmp.lt.s32.totalorder %s1105_s20, %s1194_s0 }
  0x3b   : > { %p866_p5 = pnand %p865_p0, %p864_p13  ;;  %p870_p2 = scmp.lt.s32.totalorder %s868_s18, %s863_s11 }
  0x3d   : > { %p867_p10 = pneg %p866_p5  ;;  %p871_p6 = por %p870_p2, %p869_p1 }
  0x3f   : > { %p872_p12 = pnand %p871_p6, %p867_p10 }
  0x41   : > { %875 = shalt.err (!%p872_p12)
}
  0x42   : > { %s876_s21 = scalar_lea.vmem %s270_s22, 128  ;;  %s967_s12 = smov [#allocation2]  }
  0x43   : > { %p877_p3 = scmp.ne.s32.totalorder %s270_s22, %s876_s21  ;;  %s881_s1 = sshll.u32 %s967_s12, 4  ;;  %s882_s1 = int_to_ptr.vmem [resolvable:$false] %s881_s1 }
  0x44   : > { %s883_s3 = scalar_lea.vmem %s882_s1, 256  ;;  %p884_p13 = scmp.lt.s32.totalorder %s270_s22, %s882_s1 }
  0x45   : > { %p879_p9 = pnand %p877_p3, %p865_p0  ;;  %p885_p5 = scmp.lt.s32.totalorder %s883_s3, %s876_s21 }
  0x47   : > { %p880_p7 = pneg %p879_p9  ;;  %p886_p4 = por %p885_p5, %p884_p13 }
  0x49   : > { %p887_p8 = pnand %p886_p4, %p880_p7 }
  0x4b   : > { %890 = shalt.err (!%p887_p8)
}
  0x4c   : > { %759 = dma.hbm_to_vmem [thread:$0]  (!%p1107_p11), %s1105_s20, 128, %s270_s22, %s259_s29  }
  0x4d   : > { %p1217_p10 = scmp.ne.s32.totalorder %s1210_s9, 0 }
  0x4e   : > { %s1128_s11 = sand.u32 (!%p1217_p10), 1, %s951_s25   ;;  %p1218_p4 = scmp.ne.s32.totalorder (!%p1217_p10), %s1208_s30, 0 }
  0x4f   : > { %278 = sbr.rel (%p1217_p10) target bundleno = 841 (0x349), region = 48  ;;  %s691_s13 = sshll.u32 (!%p1217_p10), %s1128_s11, 3 }
  0x50   : > { %s281_s1 = scalar_lea.sflag (!%p1217_p10), [#allocation3], %s1128_s11  ;;  %s1134_s3 = scalar_lea.vmem (!%p1217_p10), [#allocation2], %s691_s13 }
  0x54   : > { %934 = dma.done.wait (%p1218_p4), %s281_s1, 128  }
  0x55   : > { %936 = vsyncadd (%p1218_p4), %s281_s1, 4294967168  ;;  %p1219_p8 = scmp.eq.s32.totalorder %s1031_s28, 0 }
  0x57   : > { %938 = dma.done.wait (%p1219_p8), [#allocation6], 8192   ;;  %p1220_p7 = pmov %p1219_p8 }
  0x58   : > { %v968_v0 = vmov 0.0   ;;  %v357_v1 = vld [vmem:[#allocation5 + $0xf8] sm:$0xff]  ;;  %v356_v2 = vld [vmem:[#allocation5 + $0xf0] sm:$0xff]  ;;  %v355_v3 = vld [vmem:[#allocation5 + $0xe8] sm:$0xff]  ;;  %s699_s19 = sshll.u32 %s1031_s28, 7  ;;  %s322_s17 = scalar_lea.vmem [#allocation8], %s691_s13 }
  0x59   : > { %940 = vsyncadd (%p1220_p7), [#allocation6], 4294959104  ;;  %434 = vmatprep.mubr.f32.mxu0 %v968_v0  ;;  %370 = vmatprep.subr.mxu0 %v357_v1  ;;  %v354_v4 = vld [vmem:[#allocation5 + $0xe0] sm:$0xff]  ;;  %v353_v5 = vld [vmem:[#allocation5 + $0xd8] sm:$0xff]  ;;  %s594_s21 = sshll.u32 %s322_s17, 4  ;;  %s581_s30 = scalar_lea.sflag [#allocation4], %s1128_s11  ;;  %s595_s21 = int_to_ptr.vmem [resolvable:$true] %s594_s21 }
  0x5a   : > { %371 = vmatpush1.msra.mxu0 %v356_v2  ;;  %v352_v6 = vld [vmem:[#allocation5 + $0xd0] sm:$0xff]  ;;  %v351_v7 = vld [vmem:[#allocation5 + $0xc8] sm:$0xff]  ;;  %v350_v8 = vld [vmem:[#allocation5 + $0xc0] sm:$0xff]  ;;  %v360_v2 = vlaneseq  ;;  %s891_s9 = scalar_lea.vmem %s595_s21, 128  ;;  %p1221_p0 = scmp.ne.s32.totalorder %s1215_s16, 0 }
  0x5b   : > { %372 = vmatprep.subr.mxu0 %v355_v3  ;;  %v349_v9 = vld [vmem:[#allocation5 + $0xb8] sm:$0xff]  ;;  %v348_v10 = vld [vmem:[#allocation5 + $0xb0] sm:$0xff]  ;;  %v347_v11 = vld [vmem:[#allocation5 + $0xa8] sm:$0xff]  ;;  %p892_p11 = scmp.ne.s32.totalorder %s595_s21, %s891_s9  ;;  %s969_s20 = smov [#allocation8]  }
  0x5c   : > { %373 = vmatpush1.msra.mxu0 %v354_v4  ;;  %v346_v12 = vld [vmem:[#allocation5 + $0xa0] sm:$0xff]  ;;  %v345_v13 = vld [vmem:[#allocation5 + $0x98] sm:$0xff]  ;;  %v344_v14 = vld [vmem:[#allocation5 + $0x90] sm:$0xff]  ;;  %v361_v3 = vshrl.u32 %v360_v2, 7  ;;  %s895_s22 = sshll.u32 %s969_s20, 4  ;;  %s896_s22 = int_to_ptr.vmem [resolvable:$false] %s895_s22 }
  0x5d   : > { %374 = vmatprep.subr.mxu0 %v353_v5  ;;  %v474_v15 = vld [vmem:[#allocation7 + $0xf8] sm:$0xff]  ;;  %v473_v17 = vld [vmem:[#allocation7 + $0xf0] sm:$0xff]  ;;  %v343_v18 = vld [vmem:[#allocation5 + $0x88] sm:$0xff]  ;;  %p893_p1 = pnand %p892_p11, %p1221_p0  ;;  %s897_s28 = scalar_lea.vmem %s896_s22, 256 }
  0x5e   : > { %375 = vmatpush1.msra.mxu0 %v352_v6  ;;  %v458_v16 = vld [vmem:[#allocation7 + $0x78] sm:$0xff]  ;;  %702 = vmatprep.subr.mxu1 %v474_v15  ;;  %v457_v19 = vld [vmem:[#allocation7 + $0x70] sm:$0xff]  ;;  %v342_v20 = vld [vmem:[#allocation5 + $0x80] sm:$0xff]  ;;  %v362_v4 = vsub.s32 0, %v361_v3  ;;  %v366_v6 = vsub.s32 1, %v361_v3  ;;  %p898_p6 = scmp.lt.s32.totalorder %s595_s21, %s896_s22  ;;  %p899_p12 = scmp.lt.s32.totalorder %s897_s28, %s891_s9 }
  0x5f   : > { %376 = vmatprep.subr.mxu0 %v351_v7  ;;  %703 = vmatpush3.msra.mxu1 %v458_v16  ;;  %v472_v21 = vld [vmem:[#allocation7 + $0xe8] sm:$0xff]  ;;  %v341_v22 = vld [vmem:[#allocation5 + $0x78] sm:$0xff]  ;;  %v340_v24 = vld [vmem:[#allocation5 + $0x70] sm:$0xff]  ;;  %p894_p2 = pneg %p893_p1 }
  0x60   : > { %377 = vmatpush1.msra.mxu0 %v350_v8  ;;  %704 = vmatprep.subr.mxu1 %v473_v17  ;;  %v456_v23 = vld [vmem:[#allocation7 + $0x68] sm:$0xff]  ;;  %v471_v25 = vld [vmem:[#allocation7 + $0xe0] sm:$0xff]  ;;  %v470_v29 = vld [vmem:[#allocation7 + $0xd8] sm:$0xff]  ;;  %p900_p3 = por %p899_p12, %p898_p6 }
  0x61   : > { %378 = vmatprep.subr.mxu0 %v349_v9  ;;  %705 = vmatpush3.msra.mxu1 %v457_v19  ;;  %v339_v26 = vld [vmem:[#allocation5 + $0x68] sm:$0xff]  ;;  %v455_v27 = vld [vmem:[#allocation7 + $0x60] sm:$0xff]  ;;  %v337_v30 = vld [vmem:[#allocation5 + $0x58] sm:$0xff] }
  0x62   : > { %379 = vmatpush1.msra.mxu0 %v348_v10  ;;  %706 = vmatprep.subr.mxu1 %v472_v21  ;;  %v338_v28 = vld [vmem:[#allocation5 + $0x60] sm:$0xff]  ;;  %v454_v31 = vld [vmem:[#allocation7 + $0x58] sm:$0xff]  ;;  %v336_v32 = vld [vmem:[#allocation5 + $0x50] sm:$0xff]  ;;  %p901_p9 = pnand %p900_p3, %p894_p2 }
  0x63   : > { %380 = vmatprep.subr.mxu0 %v347_v11  ;;  %707 = vmatpush3.msra.mxu1 %v456_v23  ;;  %v469_v33 = vld [vmem:[#allocation7 + $0xd0] sm:$0xff]  ;;  %v335_v34 = vld [vmem:[#allocation5 + $0x48] sm:$0xff]  ;;  %v334_v36 = vld [vmem:[#allocation5 + $0x40] sm:$0xff] }
  0x64   : > { %381 = vmatpush1.msra.mxu0 %v346_v12  ;;  %708 = vmatprep.subr.mxu1 %v471_v25  ;;  %v453_v35 = vld [vmem:[#allocation7 + $0x50] sm:$0xff]  ;;  %v468_v37 = vld [vmem:[#allocation7 + $0xc8] sm:$0xff]  ;;  %v333_v38 = vld [vmem:[#allocation5 + $0x38] sm:$0xff] }
  0x65   : > { %382 = vmatprep.subr.mxu0 %v345_v13  ;;  %709 = vmatpush3.msra.mxu1 %v455_v27  ;;  %v452_v39 = vld [vmem:[#allocation7 + $0x48] sm:$0xff]  ;;  %v332_v40 = vld [vmem:[#allocation5 + $0x30] sm:$0xff]  ;;  %v467_v41 = vld [vmem:[#allocation7 + $0xc0] sm:$0xff] }
  0x66   : > { %383 = vmatpush1.msra.mxu0 %v344_v14  ;;  %710 = vmatprep.subr.mxu1 %v470_v29  ;;  %v331_v42 = vld [vmem:[#allocation5 + $0x28] sm:$0xff]  ;;  %v451_v43 = vld [vmem:[#allocation7 + $0x40] sm:$0xff]  ;;  %v466_v45 = vld [vmem:[#allocation7 + $0xb8] sm:$0xff] }
  0x67   : > { %384 = vmatprep.subr.mxu0 %v343_v18  ;;  %711 = vmatpush3.msra.mxu1 %v454_v31  ;;  %v330_v44 = vld [vmem:[#allocation5 + $0x20] sm:$0xff]  ;;  %v329_v46 = vld [vmem:[#allocation5 + $0x18] sm:$0xff]  ;;  %v328_v48 = vld [vmem:[#allocation5 + $0x10] sm:$0xff] }
  0x68   : > { %385 = vmatpush1.msra.mxu0 %v342_v20  ;;  %712 = vmatprep.subr.mxu1 %v469_v33  ;;  %v450_v47 = vld [vmem:[#allocation7 + $0x38] sm:$0xff]  ;;  %v465_v49 = vld [vmem:[#allocation7 + $0xb0] sm:$0xff]  ;;  %v327_v50 = vld [vmem:[#allocation5 + $0x8] sm:$0xff] }
  0x69   : > { %386 = vmatprep.subr.mxu0 %v341_v22  ;;  %713 = vmatpush3.msra.mxu1 %v453_v35  ;;  %v449_v51 = vld [vmem:[#allocation7 + $0x30] sm:$0xff]  ;;  %v326_v52 = vld [vmem:[#allocation5] sm:$0xff]  ;;  %v464_v53 = vld [vmem:[#allocation7 + $0xa8] sm:$0xff] }
  0x6a   : > { %387 = vmatpush1.msra.mxu0 %v340_v24  ;;  %714 = vmatprep.subr.mxu1 %v468_v37  ;;  %v323_v54 = vld [vmem:[%s1134_s3] sm:$0xff]  ;;  %v448_v55 = vld [vmem:[#allocation7 + $0x28] sm:$0xff]  ;;  %v463_v56 = vld [vmem:[#allocation7 + $0xa0] sm:$0xff]  ;;  %s592_s3 = scalar_lea.hbm %s1201_s7, %s699_s19 }
  0x6b   : > { %388 = vmatprep.subr.mxu0 %v339_v26  ;;  %715 = vmatpush3.msra.mxu1 %v452_v39  ;;  %v447_v57 = vld [vmem:[#allocation7 + $0x20] sm:$0xff]  ;;  %v462_v58 = vld [vmem:[#allocation7 + $0x98] sm:$0xff]  ;;  %v461_v60 = vld [vmem:[#allocation7 + $0x90] sm:$0xff] }
  0x6c   : > { %389 = vmatpush1.msra.mxu0 %v338_v28  ;;  %716 = vmatprep.subr.mxu1 %v467_v41  ;;  %v446_v59 = vld [vmem:[#allocation7 + $0x18] sm:$0xff]  ;;  %v445_v61 = vld [vmem:[#allocation7 + $0x10] sm:$0xff]  ;;  %v460_v62 = vld [vmem:[#allocation7 + $0x88] sm:$0xff] }
  0x6d   : > { %390 = vmatprep.subr.mxu0 %v337_v30  ;;  %717 = vmatpush3.msra.mxu1 %v451_v43  ;;  %v444_v63 = vld [vmem:[#allocation7 + $0x8] sm:$0xff]  ;;  %v459_v0 = vld [vmem:[#allocation7 + $0x80] sm:$0xff]  ;;  %v358_v5 = vld [vmem:[%s1196_s2] sm:$0x3] }
  0x6e   : > { %391 = vmatpush1.msra.mxu0 %v336_v32  ;;  %718 = vmatprep.subr.mxu1 %v466_v45  ;;  %v443_v1 = vld [vmem:[#allocation7] sm:$0xff]  ;;  %v363_v7 = vrot.slane %v358_v5, %v362_v4  ;;  %v367_v8 = vrot.slane %v358_v5, %v366_v6  ;;  %v695_v16 = vld [vmem:[%s1198_s4] ss:$0 sm:$0xff] }
  0x6f   : > { %392 = vmatprep.subr.mxu0 %v335_v34  ;;  %719 = vmatpush3.msra.mxu1 %v450_v47  ;;  %v696_v29 = vld [vmem:[%s1199_s5] ss:$0 sm:$0xff] }
  0x70   : > { %393 = vmatpush1.msra.mxu0 %v334_v36  ;;  %720 = vmatprep.subr.mxu1 %v465_v49  ;;  %v697_v31 = vld [vmem:[%s1200_s6] ss:$0 sm:$0xff] }
  0x71   : > { %394 = vmatprep.subr.mxu0 %v333_v38  ;;  %721 = vmatpush3.msra.mxu1 %v449_v51 }
  0x72   : > { %395 = vmatpush1.msra.mxu0 %v332_v40  ;;  %722 = vmatprep.subr.mxu1 %v464_v53 }
  0x73   : > { %396 = vmatprep.subr.mxu0 %v331_v42  ;;  %723 = vmatpush3.msra.mxu1 %v448_v55 }
  0x74   : > { %397 = vmatpush1.msra.mxu0 %v330_v44  ;;  %724 = vmatprep.subr.mxu1 %v463_v56 }
  0x75   : > { %398 = vmatprep.subr.mxu0 %v329_v46  ;;  %725 = vmatpush3.msra.mxu1 %v447_v57 }
  0x76   : > { %399 = vmatpush1.msra.mxu0 %v328_v48  ;;  %726 = vmatprep.subr.mxu1 %v462_v58 }
  0x77   : > { %400 = vmatprep.subr.mxu0 %v327_v50  ;;  %727 = vmatpush3.msra.mxu1 %v446_v59 }
  0x78   : > { %401 = vmatpush1.msra.mxu0 %v326_v52  ;;  %728 = vmatprep.subr.mxu1 %v461_v60 }
  0x79   : > { %435 = vmatmul.mubr.f32.vlgmr.msra.gmra.mxu0 %v323_v54  ;;  %729 = vmatpush3.msra.mxu1 %v445_v61 }
  0x7a   : > { %730 = vmatprep.subr.mxu1 %v460_v62 }
  0x7b   : > { %731 = vmatpush3.msra.mxu1 %v444_v63 }
  0x7c   : > { %732 = vmatprep.subr.mxu1 %v459_v0 }
  0x7d   : > { %733 = vmatpush3.msra.mxu1 %v443_v1 }
 0x139   : > { %v436_v9 = vpop.f32.mrf.mxu0 }
 0x13a   : > { %v437_v10 = vadd.f32 %v436_v9, %v363_v7 }
 0x13b   : > { %v438_v11 = vpop.f32.mrf.mxu0 }
 0x13c   : > { %v439_v12 = vadd.f32 %v438_v11, %v367_v8  ;;  %v441_v14 = vmax.f32 %v437_v10, 0.0 }
 0x13e   : > { %v442_v13 = vmax.f32 %v439_v12, 0.0 }
 0x140   : > { %546 = vmatprep.mubr.f32.mxu1 %v442_v13 }
 0x141   : > { %547 = vmatmul.mubr.f32.vlgmr.msra.gmra.mxu1 %v441_v14 }
 0x201   : > { %v734_v15 = vpop.f32.mrf.mxu1 }
 0x203   : > { %v735_v17 = vpop.f32.mrf.mxu1 }
 0x204   : > { %v736_v18 = vadd.f32 %v735_v17, %v734_v15 }
 0x206   : > { %v549_v19 = vadd.f32 %v736_v18, %v695_v16 }
 0x208   : > { %v552_v20 = vadd.f32 %v549_v19, %v323_v54 }
 0x20a   : > { %553 = vadd.xlane.f32.xlu0 %v552_v20 }
 0x293   : > { %v554_v21 = vpop.xlane.xlu0 %553 }
 0x294   : > { %v556_v22 = vmul.f32 0.0078125, %v554_v21 }
 0x296   : > { %v557_v23 = vsub.f32 %v552_v20, %v556_v22 }
 0x298   : > { %v558_v24 = vmul.f32 %v557_v23, %v557_v23 }
 0x29a   : > { %559 = vadd.xlane.f32.xlu0 %v558_v24 }
 0x323   : > { %v560_v25 = vpop.xlane.xlu0 %559 }
 0x324   : > { %v561_v26 = vmul.f32 0.0078125, %v560_v25 }
 0x326   : > { %v562_v27 = vadd.f32 1e-05, %v561_v26 }
 0x328   : > { %809 = vrsqrt.f32 %v562_v27 }
 0x335   : > { %v810_v28 = vpop.eup %809 }
 0x336   : > { %v564_v30 = vmul.f32 %v810_v28, %v557_v23 }
 0x338   : > { %v571_v32 = vmul.f32 %v696_v29, %v564_v30 }
 0x33a   : > { %v578_v33 = vadd.f32 %v697_v31, %v571_v32 }
 0x33c   : > { %579 = vst [vmem:[%s322_s17] sm:$0xff] %v578_v33 }
 0x33d   : > { %904 = shalt.err (!%p901_p9)
}
 0x33e   : > { %s905_s13 = scalar_lea.hbm %s592_s3, 128  ;;  %s909_s29 = scalar_lea.hbm %s1201_s7, 256 }
 0x33f   : > { %p906_p13 = scmp.ne.s32.totalorder %s592_s3, %s905_s13  ;;  %p910_p4 = scmp.lt.s32.totalorder %s592_s3, %s1201_s7 }
 0x340   : > { %p911_p8 = scmp.lt.s32.totalorder %s909_s29, %s905_s13 }
 0x341   : > { %p907_p5 = pnand %p906_p13, %p1221_p0 }
 0x342   : > { %p912_p7 = por %p911_p8, %p910_p4 }
 0x343   : > { %p908_p10 = pneg %p907_p5 }
 0x345   : > { %p913_p11 = pnand %p912_p7, %p908_p10 }
 0x347   : > { %916 = shalt.err (!%p913_p11)
}
 0x348   : > { %747 = dma.vmem_to_hbm [thread:$0]  (%p1221_p0), %s595_s21, 128, %s592_s3, %s581_s30  }
 0x349 PF: > { %s606_s19 = sand.u32 1, %s947_s24   ;;  %p1222_p1 = scmp.ne.s32.totalorder %s1209_s8, 0 }
 0x34a   : > { %p1223_p2 = scmp.ge.s32.totalorder %s959_s27, 2  ;;  %s607_s17 = scalar_lea.sflag [#allocation4], %s606_s19 }
 0x34c   : > { %p761_p6 = pnand %p1223_p2, %p1222_p1 }
 0x34e   : > { %p762_p12 = pneg %p761_p6 }
 0x350   : > { %942 = dma.done.wait (%p762_p12), %s607_s17, 128  }
 0x351   : > { %944 = vsyncadd (%p762_p12), %s607_s17, 4294967168  ;;  %p21_p3 = scmp.ge.s32.totalorder %s1082_s10, 4   ;;  %s1224_s24 = smov %s951_s25 }
 0x352   : > { %s1225_s25 = smov %s955_s26  ;;  %s1226_s26 = smov %s1091_s15 }
 0x353   : > { %s1227_s27 = smov %s1082_s10  ;;  %23 = sbr.rel (!%p21_p3) target bundleno = 9 (0x9), region = 101 }
 0x358   :  { %612 = vsyncpa [#allocation3], 1 }
 0x359   :  { %614 = vsyncpa [#allocation3 + $0x1], 1 }
 0x35a   :  { %615 = vsyncpa [#allocation6], 1 }
 0x35b   :  { %616 = vsyncpa [#allocation4], 1 }
 0x35c   :  { %618 = vsyncpa [#allocation4 + $0x1], 1 }

// kernel: tpu_custom_call.1
= control target key start
LH: loop header
LB: loop body
LE: loop exit
PB: predicated region body
PF: predicated region fallthrough
CT: control target
= control target key end

     0   :  { %s1194_s0 = inlined_call_operand.hbm [shape: f32[16,128], index: 0, kind: input, shape index: {}]   ;;  %s1195_s1 = inlined_call_operand.hbm [shape: f32[128,256], index: 1, kind: input, shape index: {}]   ;;  %s1196_s2 = inlined_call_operand.vmem [shape: f32[1,256], index: 2, kind: input, shape index: {}]   ;;  %s1197_s3 = inlined_call_operand.hbm [shape: f32[256,128], index: 3, kind: input, shape index: {}]   ;;  %s1198_s4 = inlined_call_operand.vmem [shape: f32[1,128], index: 4, kind: input, shape index: {}]   ;;  %s1199_s5 = inlined_call_operand.vmem [shape: f32[1,128], index: 5, kind: input, shape index: {}]   ;;  %s1200_s6 = inlined_call_operand.vmem [shape: f32[1,128], index: 6, kind: input, shape index: {}]   ;;  %s1201_s7 = inlined_call_operand.hbm [shape: f32[16,128], index: 7, kind: output, shape index: {}]  }
   0x1   :  { %1206 = sst [smem:[#allocation12_spill]] %s1195_s1 }
   0x2   :  { %1207 = sst [smem:[#allocation13_spill]] %s1197_s3 }
   0x3   :  { %12 = vsyncpa [#allocation3], 0 }
   0x4   :  { %14 = vsyncpa [#allocation3 + $0x1], 0 }
   0x5   :  { %15 = vsyncpa [#allocation6], 0 }
   0x6   :  { %16 = vsyncpa [#allocation4], 0 }
   0x7   :  { %18 = vsyncpa [#allocation4 + $0x1], 0  ;;  %s1010_s24 = smov 0   ;;  %s1012_s25 = smov 0  }
   0x8   :  { %s1014_s26 = smov 0   ;;  %s1016_s27 = smov 0  }
   0x9 LB: > { %s1031_s28 = sadd.s32 4294967295, %s959_s27   ;;  %s683_s29 = sadd.s32 4294967294, %s959_s27   ;;  %s959_s27 = sphi %s1016_s27, %s1227_s27   ;;  %s955_s26 = sphi %s1014_s26, %s1226_s26   ;;  %s951_s25 = sphi %s1012_s25, %s1225_s25   ;;  %s947_s24 = sphi %s1010_s24, %s1224_s24  }
   0xa   : > { %p44_p0 = scmp.ne.s32.totalorder %s951_s25, %s947_s24  ;;  %p1202_p1 = scmp.eq.s32.totalorder %s1031_s28, 0 }
   0xb   : > { %p200_p3 = scmp.eq.s32.totalorder %s683_s29, 1  ;;  %p684_p5 = scmp.ge.s32.totalorder %s959_s27, 1 }
   0xc   : > { %p1040_p4 = por %p1202_p1, %p44_p0  ;;  %p207_p7 = scmp.lt.s32.totalorder %s959_s27, 3 }
   0xd   : > { %p1045_p6 = por %p200_p3, %p44_p0  ;;  %s961_s10 = smov [#allocation5]  }
   0xe   : > { %s1208_s30 = scalar_select %p1040_p4, 1, 0 }
   0xf   : > { %s1209_s8 = scalar_select %p1045_p6, 1, 0 }
  0x10   : > { %p1050_p8 = pnand %p684_p5, %p207_p7  ;;  %s219_s11 = sshll.u32 %s961_s10, 4  ;;  %s220_s11 = int_to_ptr.vmem [resolvable:$true] %s219_s11 }
  0x11   : > { %s962_s13 = smov [#allocation7]   ;;  %s822_s15 = scalar_lea.vmem %s220_s11, 4096 }
  0x12   : > { %s1210_s9 = scalar_select %p1050_p8, 1, 0 }
  0x13   : > { %p749_p9 = pneg %p1050_p8  ;;  %s235_s14 = sshll.u32 %s962_s13, 4  ;;  %s236_s14 = int_to_ptr.vmem [resolvable:$true] %s235_s14 }
  0x14   : > { %p823_p13 = scmp.ne.s32.totalorder %s220_s11, %s822_s15  ;;  %p830_p5 = scmp.lt.s32.totalorder %s220_s11, %s220_s11 }
  0x15   : > { %p1059_p11 = pnand %p749_p9, %p1202_p1  ;;  %p831_p7 = scmp.lt.s32.totalorder %s822_s15, %s822_s15 }
  0x17   : > { %p813_p12 = pneg %p1059_p11  ;;  %p832_p10 = por %p831_p7, %p830_p5 }
  0x19   : > { %p825_p0 = pnand %p823_p13, %p813_p12 }
  0x1b   : > { %p826_p3 = pneg %p825_p0 }
  0x1d   : > { %p833_p9 = pnand %p832_p10, %p826_p3 }
  0x1f   : > { %836 = shalt.err (!%p833_p9)
}
  0x20   : > { %s963_s16 = smov 256   ;;  %s964_s17 = smov 16  }
  0x21   : > { %s1212_s1 = sld [smem:[#allocation12_spill]]  ;;  %s848_s20 = scalar_lea.vmem %s236_s14, 4096 }
  0x22   : > { %p849_p1 = scmp.ne.s32.totalorder %s236_s14, %s848_s20  ;;  %p856_p2 = scmp.lt.s32.totalorder %s236_s14, %s236_s14 }
  0x23   : > { %p857_p6 = scmp.lt.s32.totalorder %s848_s20, %s848_s20 }
  0x24   : > { %p851_p13 = pnand %p849_p1, %p813_p12 }
  0x25   : > { %p858_p5 = por %p857_p6, %p856_p2 }
  0x26   : > { %p852_p0 = pneg %p851_p13 }
  0x27   : > { %752 = dma.hbm_to_vmem [thread:$0]  (!%p1059_p11), %s1212_s1, 4096, %s220_s11, [#allocation6], %s963_s16, %s963_s16, %s964_s17  }
  0x28   : > { %p859_p10 = pnand %p858_p5, %p852_p0 }
  0x2a   : > { %862 = shalt.err (!%p859_p10)
}
  0x2b   : > { %s965_s21 = smov 128   ;;  %s966_s22 = smov 8  }
  0x2c   : > { %s1213_s3 = sld [smem:[#allocation13_spill]]  ;;  %s1082_s10 = sadd.s32 1, %s959_s27  }
  0x2d   : > { %s28_s11 = ssub.s32 %s959_s27, %s1082_s10  ;;  %s31_s13 = sadd.s32 1, %s955_s26 }
  0x2e   : > { %p29_p1 = scmp.eq.s32.totalorder %s28_s11, 0  ;;  %p38_p2 = scmp.ne.s32.totalorder %s955_s26, %s951_s25 }
  0x2f   : > { %p39_p6 = scmp.eq.s32.totalorder %s959_s27, 0  ;;  %p1214_p3 = scmp.eq.s32.totalorder %s1031_s28, 1 }
  0x30   : > { %s1091_s15 = scalar_select %p29_p1, %s955_s26, %s31_s13  }
  0x31   : > { %p40_p12 = por %p39_p6, %p38_p2  ;;  %p1095_p7 = por %p1214_p3, %p38_p2 }
  0x32   : > { %755 = dma.hbm_to_vmem [thread:$0]  (!%p1059_p11), %s1213_s3, 4096, %s236_s14, [#allocation6], %s965_s21, %s965_s21, %s966_s22  }
  0x33   : > { %s1215_s16 = scalar_select %p1095_p7, 1, 0 }
  0x34   : > { %p766_p9 = scmp.lt.s32.totalorder %s959_s27, 2  ;;  %s258_s12 = sand.u32 1, %s955_s26  }
  0x35   : > { %s688_s17 = sshll.u32 %s258_s12, 3  ;;  %s689_s14 = sshll.u32 %s959_s27, 7 }
  0x36   : > { %s1105_s20 = scalar_lea.hbm %s1194_s0, %s689_s14  ;;  %s262_s21 = scalar_lea.vmem [#allocation2], %s688_s17 }
  0x37   : > { %s269_s22 = sshll.u32 %s262_s21, 4  ;;  %p1107_p11 = pnand %p766_p9, %p40_p12  ;;  %s270_s22 = int_to_ptr.vmem [resolvable:$true] %s269_s22 }
  0x38   : > { %s259_s29 = scalar_lea.sflag [#allocation3], %s258_s12  ;;  %s863_s11 = scalar_lea.hbm %s1105_s20, 128 }
  0x39   : > { %p864_p13 = scmp.ne.s32.totalorder %s1105_s20, %s863_s11  ;;  %p865_p0 = pneg %p1107_p11 }
  0x3a   : > { %s868_s18 = scalar_lea.hbm %s1194_s0, 256  ;;  %p869_p1 = scmp.lt.s32.totalorder %s1105_s20, %s1194_s0 }
  0x3b   : > { %p866_p5 = pnand %p865_p0, %p864_p13  ;;  %p870_p2 = scmp.lt.s32.totalorder %s868_s18, %s863_s11 }
  0x3d   : > { %p867_p10 = pneg %p866_p5  ;;  %p871_p6 = por %p870_p2, %p869_p1 }
  0x3f   : > { %p872_p12 = pnand %p871_p6, %p867_p10 }
  0x41   : > { %875 = shalt.err (!%p872_p12)
}
  0x42   : > { %s876_s21 = scalar_lea.vmem %s270_s22, 128  ;;  %s967_s12 = smov [#allocation2]  }
  0x43   : > { %p877_p3 = scmp.ne.s32.totalorder %s270_s22, %s876_s21  ;;  %s881_s1 = sshll.u32 %s967_s12, 4  ;;  %s882_s1 = int_to_ptr.vmem [resolvable:$false] %s881_s1 }
  0x44   : > { %s883_s3 = scalar_lea.vmem %s882_s1, 256  ;;  %p884_p13 = scmp.lt.s32.totalorder %s270_s22, %s882_s1 }
  0x45   : > { %p879_p9 = pnand %p877_p3, %p865_p0  ;;  %p885_p5 = scmp.lt.s32.totalorder %s883_s3, %s876_s21 }
  0x47   : > { %p880_p7 = pneg %p879_p9  ;;  %p886_p4 = por %p885_p5, %p884_p13 }
  0x49   : > { %p887_p8 = pnand %p886_p4, %p880_p7 }
  0x4b   : > { %890 = shalt.err (!%p887_p8)
}
  0x4c   : > { %759 = dma.hbm_to_vmem [thread:$0]  (!%p1107_p11), %s1105_s20, 128, %s270_s22, %s259_s29  }
  0x4d   : > { %p1217_p10 = scmp.ne.s32.totalorder %s1210_s9, 0 }
  0x4e   : > { %s1128_s11 = sand.u32 (!%p1217_p10), 1, %s951_s25   ;;  %p1218_p4 = scmp.ne.s32.totalorder (!%p1217_p10), %s1208_s30, 0 }
  0x4f   : > { %278 = sbr.rel (%p1217_p10) target bundleno = 841 (0x349), region = 48  ;;  %s691_s13 = sshll.u32 (!%p1217_p10), %s1128_s11, 3 }
  0x50   : > { %s281_s1 = scalar_lea.sflag (!%p1217_p10), [#allocation3], %s1128_s11  ;;  %s1134_s3 = scalar_lea.vmem (!%p1217_p10), [#allocation2], %s691_s13 }
  0x54   : > { %934 = dma.done.wait (%p1218_p4), %s281_s1, 128  }
  0x55   : > { %936 = vsyncadd (%p1218_p4), %s281_s1, 4294967168  ;;  %p1219_p8 = scmp.eq.s32.totalorder %s1031_s28, 0 }
  0x57   : > { %938 = dma.done.wait (%p1219_p8), [#allocation6], 8192   ;;  %p1220_p7 = pmov %p1219_p8 }
  0x58   : > { %v968_v0 = vmov 0.0   ;;  %v357_v1 = vld [vmem:[#allocation5 + $0xf8] sm:$0xff]  ;;  %v356_v2 = vld [vmem:[#allocation5 + $0xf0] sm:$0xff]  ;;  %v355_v3 = vld [vmem:[#allocation5 + $0xe8] sm:$0xff]  ;;  %s699_s19 = sshll.u32 %s1031_s28, 7  ;;  %s322_s17 = scalar_lea.vmem [#allocation8], %s691_s13 }
  0x59   : > { %940 = vsyncadd (%p1220_p7), [#allocation6], 4294959104  ;;  %434 = vmatprep.mubr.f32.mxu0 %v968_v0  ;;  %370 = vmatprep.subr.mxu0 %v357_v1  ;;  %v354_v4 = vld [vmem:[#allocation5 + $0xe0] sm:$0xff]  ;;  %v353_v5 = vld [vmem:[#allocation5 + $0xd8] sm:$0xff]  ;;  %s594_s21 = sshll.u32 %s322_s17, 4  ;;  %s581_s30 = scalar_lea.sflag [#allocation4], %s1128_s11  ;;  %s595_s21 = int_to_ptr.vmem [resolvable:$true] %s594_s21 }
  0x5a   : > { %371 = vmatpush1.msra.mxu0 %v356_v2  ;;  %v352_v6 = vld [vmem:[#allocation5 + $0xd0] sm:$0xff]  ;;  %v351_v7 = vld [vmem:[#allocation5 + $0xc8] sm:$0xff]  ;;  %v350_v8 = vld [vmem:[#allocation5 + $0xc0] sm:$0xff]  ;;  %v360_v2 = vlaneseq  ;;  %s891_s9 = scalar_lea.vmem %s595_s21, 128  ;;  %p1221_p0 = scmp.ne.s32.totalorder %s1215_s16, 0 }
  0x5b   : > { %372 = vmatprep.subr.mxu0 %v355_v3  ;;  %v349_v9 = vld [vmem:[#allocation5 + $0xb8] sm:$0xff]  ;;  %v348_v10 = vld [vmem:[#allocation5 + $0xb0] sm:$0xff]  ;;  %v347_v11 = vld [vmem:[#allocation5 + $0xa8] sm:$0xff]  ;;  %p892_p11 = scmp.ne.s32.totalorder %s595_s21, %s891_s9  ;;  %s969_s20 = smov [#allocation8]  }
  0x5c   : > { %373 = vmatpush1.msra.mxu0 %v354_v4  ;;  %v346_v12 = vld [vmem:[#allocation5 + $0xa0] sm:$0xff]  ;;  %v345_v13 = vld [vmem:[#allocation5 + $0x98] sm:$0xff]  ;;  %v344_v14 = vld [vmem:[#allocation5 + $0x90] sm:$0xff]  ;;  %v361_v3 = vshrl.u32 %v360_v2, 7  ;;  %s895_s22 = sshll.u32 %s969_s20, 4  ;;  %s896_s22 = int_to_ptr.vmem [resolvable:$false] %s895_s22 }
  0x5d   : > { %374 = vmatprep.subr.mxu0 %v353_v5  ;;  %v474_v15 = vld [vmem:[#allocation7 + $0xf8] sm:$0xff]  ;;  %v473_v17 = vld [vmem:[#allocation7 + $0xf0] sm:$0xff]  ;;  %v343_v18 = vld [vmem:[#allocation5 + $0x88] sm:$0xff]  ;;  %p893_p1 = pnand %p892_p11, %p1221_p0  ;;  %s897_s28 = scalar_lea.vmem %s896_s22, 256 }
  0x5e   : > { %375 = vmatpush1.msra.mxu0 %v352_v6  ;;  %v458_v16 = vld [vmem:[#allocation7 + $0x78] sm:$0xff]  ;;  %702 = vmatprep.subr.mxu1 %v474_v15  ;;  %v457_v19 = vld [vmem:[#allocation7 + $0x70] sm:$0xff]  ;;  %v342_v20 = vld [vmem:[#allocation5 + $0x80] sm:$0xff]  ;;  %v362_v4 = vsub.s32 0, %v361_v3  ;;  %v366_v6 = vsub.s32 1, %v361_v3  ;;  %p898_p6 = scmp.lt.s32.totalorder %s595_s21, %s896_s22  ;;  %p899_p12 = scmp.lt.s32.totalorder %s897_s28, %s891_s9 }
  0x5f   : > { %376 = vmatprep.subr.mxu0 %v351_v7  ;;  %703 = vmatpush3.msra.mxu1 %v458_v16  ;;  %v472_v21 = vld [vmem:[#allocation7 + $0xe8] sm:$0xff]  ;;  %v341_v22 = vld [vmem:[#allocation5 + $0x78] sm:$0xff]  ;;  %v340_v24 = vld [vmem:[#allocation5 + $0x70] sm:$0xff]  ;;  %p894_p2 = pneg %p893_p1 }
  0x60   : > { %377 = vmatpush1.msra.mxu0 %v350_v8  ;;  %704 = vmatprep.subr.mxu1 %v473_v17  ;;  %v456_v23 = vld [vmem:[#allocation7 + $0x68] sm:$0xff]  ;;  %v471_v25 = vld [vmem:[#allocation7 + $0xe0] sm:$0xff]  ;;  %v470_v29 = vld [vmem:[#allocation7 + $0xd8] sm:$0xff]  ;;  %p900_p3 = por %p899_p12, %p898_p6 }
  0x61   : > { %378 = vmatprep.subr.mxu0 %v349_v9  ;;  %705 = vmatpush3.msra.mxu1 %v457_v19  ;;  %v339_v26 = vld [vmem:[#allocation5 + $0x68] sm:$0xff]  ;;  %v455_v27 = vld [vmem:[#allocation7 + $0x60] sm:$0xff]  ;;  %v337_v30 = vld [vmem:[#allocation5 + $0x58] sm:$0xff] }
  0x62   : > { %379 = vmatpush1.msra.mxu0 %v348_v10  ;;  %706 = vmatprep.subr.mxu1 %v472_v21  ;;  %v338_v28 = vld [vmem:[#allocation5 + $0x60] sm:$0xff]  ;;  %v454_v31 = vld [vmem:[#allocation7 + $0x58] sm:$0xff]  ;;  %v336_v32 = vld [vmem:[#allocation5 + $0x50] sm:$0xff]  ;;  %p901_p9 = pnand %p900_p3, %p894_p2 }
  0x63   : > { %380 = vmatprep.subr.mxu0 %v347_v11  ;;  %707 = vmatpush3.msra.mxu1 %v456_v23  ;;  %v469_v33 = vld [vmem:[#allocation7 + $0xd0] sm:$0xff]  ;;  %v335_v34 = vld [vmem:[#allocation5 + $0x48] sm:$0xff]  ;;  %v334_v36 = vld [vmem:[#allocation5 + $0x40] sm:$0xff] }
  0x64   : > { %381 = vmatpush1.msra.mxu0 %v346_v12  ;;  %708 = vmatprep.subr.mxu1 %v471_v25  ;;  %v453_v35 = vld [vmem:[#allocation7 + $0x50] sm:$0xff]  ;;  %v468_v37 = vld [vmem:[#allocation7 + $0xc8] sm:$0xff]  ;;  %v333_v38 = vld [vmem:[#allocation5 + $0x38] sm:$0xff] }
  0x65   : > { %382 = vmatprep.subr.mxu0 %v345_v13  ;;  %709 = vmatpush3.msra.mxu1 %v455_v27  ;;  %v452_v39 = vld [vmem:[#allocation7 + $0x48] sm:$0xff]  ;;  %v332_v40 = vld [vmem:[#allocation5 + $0x30] sm:$0xff]  ;;  %v467_v41 = vld [vmem:[#allocation7 + $0xc0] sm:$0xff] }
  0x66   : > { %383 = vmatpush1.msra.mxu0 %v344_v14  ;;  %710 = vmatprep.subr.mxu1 %v470_v29  ;;  %v331_v42 = vld [vmem:[#allocation5 + $0x28] sm:$0xff]  ;;  %v451_v43 = vld [vmem:[#allocation7 + $0x40] sm:$0xff]  ;;  %v466_v45 = vld [vmem:[#allocation7 + $0xb8] sm:$0xff] }
  0x67   : > { %384 = vmatprep.subr.mxu0 %v343_v18  ;;  %711 = vmatpush3.msra.mxu1 %v454_v31  ;;  %v330_v44 = vld [vmem:[#allocation5 + $0x20] sm:$0xff]  ;;  %v329_v46 = vld [vmem:[#allocation5 + $0x18] sm:$0xff]  ;;  %v328_v48 = vld [vmem:[#allocation5 + $0x10] sm:$0xff] }
  0x68   : > { %385 = vmatpush1.msra.mxu0 %v342_v20  ;;  %712 = vmatprep.subr.mxu1 %v469_v33  ;;  %v450_v47 = vld [vmem:[#allocation7 + $0x38] sm:$0xff]  ;;  %v465_v49 = vld [vmem:[#allocation7 + $0xb0] sm:$0xff]  ;;  %v327_v50 = vld [vmem:[#allocation5 + $0x8] sm:$0xff] }
  0x69   : > { %386 = vmatprep.subr.mxu0 %v341_v22  ;;  %713 = vmatpush3.msra.mxu1 %v453_v35  ;;  %v449_v51 = vld [vmem:[#allocation7 + $0x30] sm:$0xff]  ;;  %v326_v52 = vld [vmem:[#allocation5] sm:$0xff]  ;;  %v464_v53 = vld [vmem:[#allocation7 + $0xa8] sm:$0xff] }
  0x6a   : > { %387 = vmatpush1.msra.mxu0 %v340_v24  ;;  %714 = vmatprep.subr.mxu1 %v468_v37  ;;  %v323_v54 = vld [vmem:[%s1134_s3] sm:$0xff]  ;;  %v448_v55 = vld [vmem:[#allocation7 + $0x28] sm:$0xff]  ;;  %v463_v56 = vld [vmem:[#allocation7 + $0xa0] sm:$0xff]  ;;  %s592_s3 = scalar_lea.hbm %s1201_s7, %s699_s19 }
  0x6b   : > { %388 = vmatprep.subr.mxu0 %v339_v26  ;;  %715 = vmatpush3.msra.mxu1 %v452_v39  ;;  %v447_v57 = vld [vmem:[#allocation7 + $0x20] sm:$0xff]  ;;  %v462_v58 = vld [vmem:[#allocation7 + $0x98] sm:$0xff]  ;;  %v461_v60 = vld [vmem:[#allocation7 + $0x90] sm:$0xff] }
  0x6c   : > { %389 = vmatpush1.msra.mxu0 %v338_v28  ;;  %716 = vmatprep.subr.mxu1 %v467_v41  ;;  %v446_v59 = vld [vmem:[#allocation7 + $0x18] sm:$0xff]  ;;  %v445_v61 = vld [vmem:[#allocation7 + $0x10] sm:$0xff]  ;;  %v460_v62 = vld [vmem:[#allocation7 + $0x88] sm:$0xff] }
  0x6d   : > { %390 = vmatprep.subr.mxu0 %v337_v30  ;;  %717 = vmatpush3.msra.mxu1 %v451_v43  ;;  %v444_v63 = vld [vmem:[#allocation7 + $0x8] sm:$0xff]  ;;  %v459_v0 = vld [vmem:[#allocation7 + $0x80] sm:$0xff]  ;;  %v358_v5 = vld [vmem:[%s1196_s2] sm:$0x3] }
  0x6e   : > { %391 = vmatpush1.msra.mxu0 %v336_v32  ;;  %718 = vmatprep.subr.mxu1 %v466_v45  ;;  %v443_v1 = vld [vmem:[#allocation7] sm:$0xff]  ;;  %v363_v7 = vrot.slane %v358_v5, %v362_v4  ;;  %v367_v8 = vrot.slane %v358_v5, %v366_v6  ;;  %v695_v16 = vld [vmem:[%s1198_s4] ss:$0 sm:$0xff] }
  0x6f   : > { %392 = vmatprep.subr.mxu0 %v335_v34  ;;  %719 = vmatpush3.msra.mxu1 %v450_v47  ;;  %v696_v29 = vld [vmem:[%s1199_s5] ss:$0 sm:$0xff] }
  0x70   : > { %393 = vmatpush1.msra.mxu0 %v334_v36  ;;  %720 = vmatprep.subr.mxu1 %v465_v49  ;;  %v697_v31 = vld [vmem:[%s1200_s6] ss:$0 sm:$0xff] }
  0x71   : > { %394 = vmatprep.subr.mxu0 %v333_v38  ;;  %721 = vmatpush3.msra.mxu1 %v449_v51 }
  0x72   : > { %395 = vmatpush1.msra.mxu0 %v332_v40  ;;  %722 = vmatprep.subr.mxu1 %v464_v53 }
  0x73   : > { %396 = vmatprep.subr.mxu0 %v331_v42  ;;  %723 = vmatpush3.msra.mxu1 %v448_v55 }
  0x74   : > { %397 = vmatpush1.msra.mxu0 %v330_v44  ;;  %724 = vmatprep.subr.mxu1 %v463_v56 }
  0x75   : > { %398 = vmatprep.subr.mxu0 %v329_v46  ;;  %725 = vmatpush3.msra.mxu1 %v447_v57 }
  0x76   : > { %399 = vmatpush1.msra.mxu0 %v328_v48  ;;  %726 = vmatprep.subr.mxu1 %v462_v58 }
  0x77   : > { %400 = vmatprep.subr.mxu0 %v327_v50  ;;  %727 = vmatpush3.msra.mxu1 %v446_v59 }
  0x78   : > { %401 = vmatpush1.msra.mxu0 %v326_v52  ;;  %728 = vmatprep.subr.mxu1 %v461_v60 }
  0x79   : > { %435 = vmatmul.mubr.f32.vlgmr.msra.gmra.mxu0 %v323_v54  ;;  %729 = vmatpush3.msra.mxu1 %v445_v61 }
  0x7a   : > { %730 = vmatprep.subr.mxu1 %v460_v62 }
  0x7b   : > { %731 = vmatpush3.msra.mxu1 %v444_v63 }
  0x7c   : > { %732 = vmatprep.subr.mxu1 %v459_v0 }
  0x7d   : > { %733 = vmatpush3.msra.mxu1 %v443_v1 }
 0x139   : > { %v436_v9 = vpop.f32.mrf.mxu0 }
 0x13a   : > { %v437_v10 = vadd.f32 %v436_v9, %v363_v7 }
 0x13b   : > { %v438_v11 = vpop.f32.mrf.mxu0 }
 0x13c   : > { %v439_v12 = vadd.f32 %v438_v11, %v367_v8  ;;  %v441_v14 = vmax.f32 %v437_v10, 0.0 }
 0x13e   : > { %v442_v13 = vmax.f32 %v439_v12, 0.0 }
 0x140   : > { %546 = vmatprep.mubr.f32.mxu1 %v442_v13 }
 0x141   : > { %547 = vmatmul.mubr.f32.vlgmr.msra.gmra.mxu1 %v441_v14 }
 0x201   : > { %v734_v15 = vpop.f32.mrf.mxu1 }
 0x203   : > { %v735_v17 = vpop.f32.mrf.mxu1 }
 0x204   : > { %v736_v18 = vadd.f32 %v735_v17, %v734_v15 }
 0x206   : > { %v549_v19 = vadd.f32 %v736_v18, %v695_v16 }
 0x208   : > { %v552_v20 = vadd.f32 %v549_v19, %v323_v54 }
 0x20a   : > { %553 = vadd.xlane.f32.xlu0 %v552_v20 }
 0x293   : > { %v554_v21 = vpop.xlane.xlu0 %553 }
 0x294   : > { %v556_v22 = vmul.f32 0.0078125, %v554_v21 }
 0x296   : > { %v557_v23 = vsub.f32 %v552_v20, %v556_v22 }
 0x298   : > { %v558_v24 = vmul.f32 %v557_v23, %v557_v23 }
 0x29a   : > { %559 = vadd.xlane.f32.xlu0 %v558_v24 }
 0x323   : > { %v560_v25 = vpop.xlane.xlu0 %559 }
 0x324   : > { %v561_v26 = vmul.f32 0.0078125, %v560_v25 }
 0x326   : > { %v562_v27 = vadd.f32 1e-05, %v561_v26 }
 0x328   : > { %809 = vrsqrt.f32 %v562_v27 }
 0x335   : > { %v810_v28 = vpop.eup %809 }
 0x336   : > { %v564_v30 = vmul.f32 %v810_v28, %v557_v23 }
 0x338   : > { %v571_v32 = vmul.f32 %v696_v29, %v564_v30 }
 0x33a   : > { %v578_v33 = vadd.f32 %v697_v31, %v571_v32 }
 0x33c   : > { %579 = vst [vmem:[%s322_s17] sm:$0xff] %v578_v33 }
 0x33d   : > { %904 = shalt.err (!%p901_p9)
}
 0x33e   : > { %s905_s13 = scalar_lea.hbm %s592_s3, 128  ;;  %s909_s29 = scalar_lea.hbm %s1201_s7, 256 }
 0x33f   : > { %p906_p13 = scmp.ne.s32.totalorder %s592_s3, %s905_s13  ;;  %p910_p4 = scmp.lt.s32.totalorder %s592_s3, %s1201_s7 }
 0x340   : > { %p911_p8 = scmp.lt.s32.totalorder %s909_s29, %s905_s13 }
 0x341   : > { %p907_p5 = pnand %p906_p13, %p1221_p0 }
 0x342   : > { %p912_p7 = por %p911_p8, %p910_p4 }
 0x343   : > { %p908_p10 = pneg %p907_p5 }
 0x345   : > { %p913_p11 = pnand %p912_p7, %p908_p10 }
 0x347   : > { %916 = shalt.err (!%p913_p11)
}
 0x348   : > { %747 = dma.vmem_to_hbm [thread:$0]  (%p1221_p0), %s595_s21, 128, %s592_s3, %s581_s30  }
 0x349 PF: > { %s606_s19 = sand.u32 1, %s947_s24   ;;  %p1222_p1 = scmp.ne.s32.totalorder %s1209_s8, 0 }
 0x34a   : > { %p1223_p2 = scmp.ge.s32.totalorder %s959_s27, 2  ;;  %s607_s17 = scalar_lea.sflag [#allocation4], %s606_s19 }
 0x34c   : > { %p761_p6 = pnand %p1223_p2, %p1222_p1 }
 0x34e   : > { %p762_p12 = pneg %p761_p6 }
 0x350   : > { %942 = dma.done.wait (%p762_p12), %s607_s17, 128  }
 0x351   : > { %944 = vsyncadd (%p762_p12), %s607_s17, 4294967168  ;;  %p21_p3 = scmp.ge.s32.totalorder %s1082_s10, 4   ;;  %s1224_s24 = smov %s951_s25 }
 0x352   : > { %s1225_s25 = smov %s955_s26  ;;  %s1226_s26 = smov %s1091_s15 }
 0x353   : > { %s1227_s27 = smov %s1082_s10  ;;  %23 = sbr.rel (!%p21_p3) target bundleno = 9 (0x9), region = 101 }
 0x358   :  { %612 = vsyncpa [#allocation3], 1 }
 0x359   :  { %614 = vsyncpa [#allocation3 + $0x1], 1 }
 0x35a   :  { %615 = vsyncpa [#allocation6], 1 }
 0x35b   :  { %616 = vsyncpa [#allocation4], 1 }
 0x35c   :  { %618 = vsyncpa [#allocation4 + $0x1], 1 }

</bundles_post_ra>
